<compile_context>
chip_gen: v7x
topology: tpu7x:2x2x1
jax: 0.10.0
libtpu: 0.0.40
codegen_flags: <defaults>
</compile_context>

<pallas_src>
import functools
import math

import jax
import jax.numpy as jnp
from jax.experimental import pallas as pl
from jax.experimental.pallas import tpu as pltpu

EPS = 1e-6                     # ConvNeXt-style LayerNorm eps
_SQRT2_INV = 0.7071067811865476


def _round_up(v, m):
    return ((v + m - 1) // m) * m


def _gelu_exact(x):
    # nn.GELU() default (exact erf form).
    return 0.5 * x * (1.0 + jax.lax.erf(x * _SQRT2_INV))


# ----------------------------------------------------------------------------------
# Stage 1: for one (d1p, bd2) column block of x (native layout):
#   y  = LN over dim1 (rows)                      (masked against dim1 padding)
#   x1 = x + W1b @ gelu(W1a @ y + b1a) + b1b      (left-multiply == MLP1 on x.T)
# also emits mean/var over dim1 of x1, needed by stage 2's LayerNorm.
# ----------------------------------------------------------------------------------
def _stage1_kernel(x_ref, nw_ref, nb_ref, w1a_ref, b1a_ref, w1b_ref, b1b_ref,
                   x1_ref, mu_ref, var_ref, *, d1, d1p):
    x = x_ref[...].astype(jnp.float32)                    # (d1p, bd2)
    inv_n = jnp.float32(1.0 / d1)

    row_ok = None
    if d1p != d1:
        row_ok = jax.lax.broadcasted_iota(jnp.int32, x.shape, 0) < d1

    def row_stats(v):
        # padded rows of v are exactly zero, so the unmasked sum is the true sum
        mu = jnp.sum(v, axis=0, keepdims=True) * inv_n
        c = v - mu
        if row_ok is not None:
            c = jnp.where(row_ok, c, 0.0)                 # mask centered values for var
        var = jnp.sum(c * c, axis=0, keepdims=True) * inv_n
        return mu, var, c

    # LayerNorm over dim1 (per-column), f32 math
    _, var1, c1 = row_stats(x)
    y = c1 * jax.lax.rsqrt(var1 + EPS) * nw_ref[...] + nb_ref[...]
    if row_ok is not None:
        y = jnp.where(row_ok, y, 0.0)

    # MLP1 as left-multiply; bf16 operands, f32 accumulation on the MXU
    h = jnp.dot(w1a_ref[...], y.astype(jnp.bfloat16),
                preferred_element_type=jnp.float32)
    h = _gelu_exact(h + b1a_ref[...])
    y1 = jnp.dot(w1b_ref[...], h.astype(jnp.bfloat16),
                 preferred_element_type=jnp.float32)
    x1 = x + y1 + b1b_ref[...]                            # residual in f32

    # statistics for stage-2's LayerNorm (reduction over dim1 lives here)
    mu2, var2, _ = row_stats(x1)

    x1_ref[...] = x1
    mu_ref[...] = mu2
    var_ref[...] = var2


# ----------------------------------------------------------------------------------
# Stage 2: for one (bd1, d2p) row block of x1:
#   y   = (x1 - mu) * rsqrt(var + eps) * nw + nb          (stats from stage 1)
#   out = x1 + gelu(y @ W2a^T + b2a) @ W2b^T + b2b        (right-multiply == MLP2)
# ----------------------------------------------------------------------------------
def _stage2_kernel(x1_ref, mu_ref, var_ref, nw_ref, nb_ref,
                   w2a_t_ref, b2a_ref, w2b_t_ref, b2b_ref, out_ref):
    x1 = x1_ref[...]                                      # (bd1, d2p) f32
    y = (x1 - mu_ref[...]) * jax.lax.rsqrt(var_ref[...] + EPS) \
        * nw_ref[...] + nb_ref[...]

    h = jnp.dot(y.astype(jnp.bfloat16), w2a_t_ref[...],
                preferred_element_type=jnp.float32)
    h = _gelu_exact(h + b2a_ref[...])
    z = jnp.dot(h.astype(jnp.bfloat16), w2b_t_ref[...],
                preferred_element_type=jnp.float32)

    out_ref[...] = (x1 + z + b2b_ref[...]).astype(out_ref.dtype)


def mixer_block(x, params, *, block_d1=128, block_d2=128):
    """x: (dim1, dim2) float32 -> (dim1, dim2). Native layout, no wrapper transposes."""
    d1, d2 = x.shape
    assert block_d2 % 128 == 0, "lane-axis block must be a multiple of 128"

    bd2 = block_d2
    d2p = _round_up(d2, bd2)                              # lane axis -> multiple of 128
    bd1 = min(_round_up(block_d1, 8), _round_up(d1, 8))   # sublane row block (>= 8)
    d1p = _round_up(d1, bd1)

    f32, bf16 = jnp.float32, jnp.bfloat16

    def pad2(a, r, c):
        return jnp.pad(a, ((0, r - a.shape[0]), (0, c - a.shape[1])))

    xp = pad2(x.astype(f32), d1p, d2p)

    # LayerNorm params / MLP1 biases live along dim1 -> column vectors (lane-broadcast once)
    nw = pad2(params["norm_w"].astype(f32).reshape(d1, 1), d1p, 1)
    nb = pad2(params["norm_b"].astype(f32).reshape(d1, 1), d1p, 1)
    b1a = pad2(params["b1a"].astype(f32).reshape(d1, 1), d1p, 1)
    b1b = pad2(params["b1b"].astype(f32).reshape(d1, 1), d1p, 1)
    # MLP2 biases live along dim2 -> row vectors (cheap sublane broadcast)
    b2a = pad2(params["b2a"].astype(f32).reshape(1, d2), 1, d2p)
    b2b = pad2(params["b2b"].astype(f32).reshape(1, d2), 1, d2p)

    # Weights: zero-pad, pre-transpose W2 for the right-multiply form, cast to bf16
    w1a = pad2(params["w1a"].astype(f32), d1p, d1p).astype(bf16)
    w1b = pad2(params["w1b"].astype(f32), d1p, d1p).astype(bf16)
    w2a_t = pad2(params["w2a"].T.astype(f32), d2p, d2p).astype(bf16)
    w2b_t = pad2(params["w2b"].T.astype(f32), d2p, d2p).astype(bf16)

    cparams = pltpu.CompilerParams(
        dimension_semantics=("parallel",),                # megacore sharding on v7x
        vmem_limit_bytes=32 * 1024 * 1024,
    )

    # ---- stage 1: grid over dim2 column blocks ----
    n_col = d2p // bd2
    x1, mu2, var2 = pl.pallas_call(
        functools.partial(_stage1_kernel, d1=d1, d1p=d1p),
        grid=(n_col,),
        in_specs=[
            pl.BlockSpec((d1p, bd2), lambda j: (0, j)),   # x column block (pipelined)
            pl.BlockSpec((d1p, 1), lambda j: (0, 0)),     # norm weight   (resident)
            pl.BlockSpec((d1p, 1), lambda j: (0, 0)),     # norm bias
            pl.BlockSpec((d1p, d1p), lambda j: (0, 0)),   # W1a (bf16)
            pl.BlockSpec((d1p, 1), lambda j: (0, 0)),     # b1a
            pl.BlockSpec((d1p, d1p), lambda j: (0, 0)),   # W1b (bf16)
            pl.BlockSpec((d1p, 1), lambda j: (0, 0)),     # b1b
        ],
        out_specs=(
            pl.BlockSpec((d1p, bd2), lambda j: (0, j)),   # x1
            pl.BlockSpec((1, bd2), lambda j: (0, j)),     # mean over dim1 of x1
            pl.BlockSpec((1, bd2), lambda j: (0, j)),     # var  over dim1 of x1
        ),
        out_shape=(
            jax.ShapeDtypeStruct((d1p, d2p), f32),
            jax.ShapeDtypeStruct((1, d2p), f32),
            jax.ShapeDtypeStruct((1, d2p), f32),
        ),
        compiler_params=cparams,
    )(xp, nw, nb, w1a, b1a, w1b, b1b)

    # ---- stage 2: grid over dim1 row blocks ----
    n_row = d1p // bd1
    out_p = pl.pallas_call(
        _stage2_kernel,
        grid=(n_row,),
        in_specs=[
            pl.BlockSpec((bd1, d2p), lambda i: (i, 0)),   # x1 row block (pipelined)
            pl.BlockSpec((1, d2p), lambda i: (0, 0)),     # mean (resident)
            pl.BlockSpec((1, d2p), lambda i: (0, 0)),     # var
            pl.BlockSpec((bd1, 1), lambda i: (i, 0)),     # norm weight rows
            pl.BlockSpec((bd1, 1), lambda i: (i, 0)),     # norm bias rows
            pl.BlockSpec((d2p, d2p), lambda i: (0, 0)),   # W2a^T (bf16)
            pl.BlockSpec((1, d2p), lambda i: (0, 0)),     # b2a
            pl.BlockSpec((d2p, d2p), lambda i: (0, 0)),   # W2b^T (bf16)
            pl.BlockSpec((1, d2p), lambda i: (0, 0)),     # b2b
        ],
        out_specs=pl.BlockSpec((bd1, d2p), lambda i: (i, 0)),
        out_shape=jax.ShapeDtypeStruct((d1p, d2p), x.dtype),
        compiler_params=cparams,
    )(x1, mu2, var2, nw, nb, w2a_t, b2a, w2b_t, b2b)

    return out_p[:d1, :d2]


def init_params(key, dim1, dim2):
    ks = jax.random.split(key, 10)
    s1 = 1.0 / math.sqrt(dim1)
    s2 = 1.0 / math.sqrt(dim2)
    u = lambda k, shape, s: jax.random.uniform(k, shape, jnp.float32, -s, s)
    return {
        "norm_w": 1.0 + 0.1 * jax.random.normal(ks[8], (dim1,), jnp.float32),
        "norm_b": 0.1 * jax.random.normal(ks[9], (dim1,), jnp.float32),
        "w1a": u(ks[0], (dim1, dim1), s1), "b1a": u(ks[1], (dim1,), s1),
        "w1b": u(ks[2], (dim1, dim1), s1), "b1b": u(ks[3], (dim1,), s1),
        "w2a": u(ks[4], (dim2, dim2), s2), "b2a": u(ks[5], (dim2,), s2),
        "w2b": u(ks[6], (dim2, dim2), s2), "b2b": u(ks[7], (dim2,), s2),
    }


def ref_forward(x, p, *, bf16_matmul=False):
    """Pure-JAX reference mirroring the PyTorch forward exactly (optionally bf16 matmuls)."""
    def mm(a, b):
        if bf16_matmul:
            return jnp.dot(a.astype(jnp.bfloat16), b.astype(jnp.bfloat16),
                           preferred_element_type=jnp.float32)
        return jnp.dot(a, b)

    def ln(v):
        mu = v.mean(-1, keepdims=True)
        var = ((v - mu) ** 2).mean(-1, keepdims=True)
        return (v - mu) * jax.lax.rsqrt(var + EPS) * p["norm_w"] + p["norm_b"]

    def gelu(v):
        return 0.5 * v * (1.0 + jax.lax.erf(v * _SQRT2_INV))

    xt = x.T
    y = ln(xt)
    y = mm(gelu(mm(y, p["w1a"].T) + p["b1a"]), p["w1b"].T) + p["b1b"]
    xt = xt + y
    y = ln(xt).T
    z = mm(gelu(mm(y, p["w2a"].T) + p["b2a"]), p["w2b"].T) + p["b2b"]
    xt = xt + z.T
    return xt.T


if __name__ == "__main__":
    # Deliberately ragged small shapes: dim1=52 pads to 64 (2 row blocks of 32),
    # dim2=200 pads to 256 (2 lane-dense column blocks of 128) -> exercises both grids
    # and the masked-LayerNorm padding path.
    dim1, dim2 = 52, 200
    key = jax.random.PRNGKey(0)
    kx, kp = jax.random.split(key)
    x = jax.random.normal(kx, (dim1, dim2), jnp.float32)
    params = init_params(kp, dim1, dim2)

    out = jax.block_until_ready(mixer_block(x, params, block_d1=32, block_d2=128))

    ref_bf = jax.block_until_ready(ref_forward(x, params, bf16_matmul=True))
    ref_f32 = jax.block_until_ready(ref_forward(x, params, bf16_matmul=False))

    assert out.shape == (dim1, dim2)
    # tight check against a reference with matching (bf16-operand) matmul numerics
    assert jnp.allclose(out, ref_bf, atol=1e-2, rtol=1e-2), \
        float(jnp.max(jnp.abs(out - ref_bf)))
    # loose check against the exact-f32 PyTorch-equivalent forward
    assert jnp.allclose(out, ref_f32, atol=1e-1, rtol=1e-1), \
        float(jnp.max(jnp.abs(out - ref_f32)))
    print("KERNEL_OK")
</pallas_src>

<mosaic_0001>
module attributes {stable_mosaic.version = 11 : i64} {
  func.func @_stage1_kernel(%arg0: i32, %arg1: memref<64x128xf32, #tpu.memory_space<vmem>>, %arg2: memref<64x1xf32, #tpu.memory_space<vmem>>, %arg3: memref<64x1xf32, #tpu.memory_space<vmem>>, %arg4: memref<64x64xbf16, #tpu.memory_space<vmem>>, %arg5: memref<64x1xf32, #tpu.memory_space<vmem>>, %arg6: memref<64x64xbf16, #tpu.memory_space<vmem>>, %arg7: memref<64x1xf32, #tpu.memory_space<vmem>>, %arg8: memref<64x128xf32, #tpu.memory_space<vmem>>, %arg9: memref<1x128xf32, #tpu.memory_space<vmem>>, %arg10: memref<1x128xf32, #tpu.memory_space<vmem>>) attributes {dimension_semantics = [#tpu.dimension_semantics<parallel>], iteration_bounds = array<i64: 2>, scalar_prefetch = 0 : i64, scratch_operands = 0 : i64, tpu.core_type = #tpu.core_type<tc>, window_params = [{transform_indices = @transform_0, window_bounds = array<i64: 64, 128>}, {pipeline_mode = #tpu.pipeline_mode<synchronous>, transform_indices = @transform_1, window_bounds = array<i64: 64, 1>}, {pipeline_mode = #tpu.pipeline_mode<synchronous>, transform_indices = @transform_2, window_bounds = array<i64: 64, 1>}, {pipeline_mode = #tpu.pipeline_mode<synchronous>, transform_indices = @transform_3, window_bounds = array<i64: 64, 64>}, {pipeline_mode = #tpu.pipeline_mode<synchronous>, transform_indices = @transform_4, window_bounds = array<i64: 64, 1>}, {pipeline_mode = #tpu.pipeline_mode<synchronous>, transform_indices = @transform_5, window_bounds = array<i64: 64, 64>}, {pipeline_mode = #tpu.pipeline_mode<synchronous>, transform_indices = @transform_6, window_bounds = array<i64: 64, 1>}, {transform_indices = @transform_7, window_bounds = array<i64: 64, 128>}, {transform_indices = @transform_8, window_bounds = array<i64: 1, 128>}, {transform_indices = @transform_9, window_bounds = array<i64: 1, 128>}]} {
    %c0 = arith.constant 0 : index
    %c0_0 = arith.constant 0 : index
    %0 = vector.load %arg1[%c0, %c0_0] : memref<64x128xf32, #tpu.memory_space<vmem>>, vector<64x128xf32>
    %1 = tpu.iota {dimensions = array<i32: 0>} : vector<64x128xi32>
    %c52_i32 = arith.constant 52 : i32
    %2 = vector.broadcast %c52_i32 : i32 to vector<64x128xi32>
    %3 = arith.cmpi slt, %1, %2 : vector<64x128xi32>
    %cst = arith.constant dense<0.000000e+00> : vector<128xf32>
    %4 = vector.multi_reduction <add>, %0, %cst [0] : vector<64x128xf32> to vector<128xf32>
    %5 = vector.shape_cast %4 : vector<128xf32> to vector<1x128xf32>
    %cst_1 = arith.constant 0.0192307699 : f32
    %6 = vector.broadcast %cst_1 : f32 to vector<1x128xf32>
    %7 = arith.mulf %5, %6 : vector<1x128xf32>
    %8 = vector.broadcast %7 : vector<1x128xf32> to vector<64x128xf32>
    %9 = arith.subf %0, %8 : vector<64x128xf32>
    %cst_2 = arith.constant 0.000000e+00 : f32
    %10 = vector.broadcast %cst_2 : f32 to vector<64x128xf32>
    %11 = arith.select %3, %9, %10 : vector<64x128xi1>, vector<64x128xf32>
    %12 = arith.mulf %11, %11 : vector<64x128xf32>
    %cst_3 = arith.constant dense<0.000000e+00> : vector<128xf32>
    %13 = vector.multi_reduction <add>, %12, %cst_3 [0] : vector<64x128xf32> to vector<128xf32>
    %14 = vector.shape_cast %13 : vector<128xf32> to vector<1x128xf32>
    %cst_4 = arith.constant 0.0192307699 : f32
    %15 = vector.broadcast %cst_4 : f32 to vector<1x128xf32>
    %16 = arith.mulf %14, %15 : vector<1x128xf32>
    %cst_5 = arith.constant 9.99999997E-7 : f32
    %17 = vector.broadcast %cst_5 : f32 to vector<1x128xf32>
    %18 = arith.addf %16, %17 : vector<1x128xf32>
    %19 = math.rsqrt %18 : vector<1x128xf32>
    %20 = vector.broadcast %19 : vector<1x128xf32> to vector<64x128xf32>
    %21 = arith.mulf %11, %20 : vector<64x128xf32>
    %c0_6 = arith.constant 0 : index
    %c0_7 = arith.constant 0 : index
    %22 = vector.load %arg2[%c0_6, %c0_7] : memref<64x1xf32, #tpu.memory_space<vmem>>, vector<64x1xf32>
    %23 = vector.broadcast %22 : vector<64x1xf32> to vector<64x128xf32>
    %24 = arith.mulf %21, %23 : vector<64x128xf32>
    %c0_8 = arith.constant 0 : index
    %c0_9 = arith.constant 0 : index
    %25 = vector.load %arg3[%c0_8, %c0_9] : memref<64x1xf32, #tpu.memory_space<vmem>>, vector<64x1xf32>
    %26 = vector.broadcast %25 : vector<64x1xf32> to vector<64x128xf32>
    %27 = arith.addf %24, %26 : vector<64x128xf32>
    %cst_10 = arith.constant 0.000000e+00 : f32
    %28 = vector.broadcast %cst_10 : f32 to vector<64x128xf32>
    %29 = arith.select %3, %27, %28 : vector<64x128xi1>, vector<64x128xf32>
    %c0_11 = arith.constant 0 : index
    %c0_12 = arith.constant 0 : index
    %30 = vector.load %arg4[%c0_11, %c0_12] : memref<64x64xbf16, #tpu.memory_space<vmem>>, vector<64x64xbf16>
    %31 = arith.truncf %29 : vector<64x128xf32> to vector<64x128xbf16>
    %cst_13 = arith.constant dense<0.000000e+00> : vector<64x128xf32>
    %32 = tpu.matmul %30, %31, %cst_13 {dimension_numbers = #tpu.dot_dimension_numbers<[1], [0], [0], [1], [0, 0, 1, 1], [], []>} : vector<64x64xbf16>, vector<64x128xbf16>, vector<64x128xf32> -> vector<64x128xf32>
    %c0_14 = arith.constant 0 : index
    %c0_15 = arith.constant 0 : index
    %33 = vector.load %arg5[%c0_14, %c0_15] : memref<64x1xf32, #tpu.memory_space<vmem>>, vector<64x1xf32>
    %34 = vector.broadcast %33 : vector<64x1xf32> to vector<64x128xf32>
    %35 = arith.addf %32, %34 : vector<64x128xf32>
    %cst_16 = arith.constant 5.000000e-01 : f32
    %36 = vector.broadcast %cst_16 : f32 to vector<64x128xf32>
    %37 = arith.mulf %36, %35 : vector<64x128xf32>
    %cst_17 = arith.constant 0.707106769 : f32
    %38 = vector.broadcast %cst_17 : f32 to vector<64x128xf32>
    %39 = arith.mulf %35, %38 : vector<64x128xf32>
    %40 = math.erf %39 : vector<64x128xf32>
    %cst_18 = arith.constant 1.000000e+00 : f32
    %41 = vector.broadcast %cst_18 : f32 to vector<64x128xf32>
    %42 = arith.addf %41, %40 : vector<64x128xf32>
    %43 = arith.mulf %37, %42 : vector<64x128xf32>
    %c0_19 = arith.constant 0 : index
    %c0_20 = arith.constant 0 : index
    %44 = vector.load %arg6[%c0_19, %c0_20] : memref<64x64xbf16, #tpu.memory_space<vmem>>, vector<64x64xbf16>
    %45 = arith.truncf %43 : vector<64x128xf32> to vector<64x128xbf16>
    %cst_21 = arith.constant dense<0.000000e+00> : vector<64x128xf32>
    %46 = tpu.matmul %44, %45, %cst_21 {dimension_numbers = #tpu.dot_dimension_numbers<[1], [0], [0], [1], [0, 0, 1, 1], [], []>} : vector<64x64xbf16>, vector<64x128xbf16>, vector<64x128xf32> -> vector<64x128xf32>
    %47 = arith.addf %0, %46 : vector<64x128xf32>
    %c0_22 = arith.constant 0 : index
    %c0_23 = arith.constant 0 : index
    %48 = vector.load %arg7[%c0_22, %c0_23] : memref<64x1xf32, #tpu.memory_space<vmem>>, vector<64x1xf32>
    %49 = vector.broadcast %48 : vector<64x1xf32> to vector<64x128xf32>
    %50 = arith.addf %47, %49 : vector<64x128xf32>
    %cst_24 = arith.constant dense<0.000000e+00> : vector<128xf32>
    %51 = vector.multi_reduction <add>, %50, %cst_24 [0] : vector<64x128xf32> to vector<128xf32>
    %52 = vector.shape_cast %51 : vector<128xf32> to vector<1x128xf32>
    %cst_25 = arith.constant 0.0192307699 : f32
    %53 = vector.broadcast %cst_25 : f32 to vector<1x128xf32>
    %54 = arith.mulf %52, %53 : vector<1x128xf32>
    %55 = vector.broadcast %54 : vector<1x128xf32> to vector<64x128xf32>
    %56 = arith.subf %50, %55 : vector<64x128xf32>
    %cst_26 = arith.constant 0.000000e+00 : f32
    %57 = vector.broadcast %cst_26 : f32 to vector<64x128xf32>
    %58 = arith.select %3, %56, %57 : vector<64x128xi1>, vector<64x128xf32>
    %59 = arith.mulf %58, %58 : vector<64x128xf32>
    %cst_27 = arith.constant dense<0.000000e+00> : vector<128xf32>
    %60 = vector.multi_reduction <add>, %59, %cst_27 [0] : vector<64x128xf32> to vector<128xf32>
    %61 = vector.shape_cast %60 : vector<128xf32> to vector<1x128xf32>
    %cst_28 = arith.constant 0.0192307699 : f32
    %62 = vector.broadcast %cst_28 : f32 to vector<1x128xf32>
    %63 = arith.mulf %61, %62 : vector<1x128xf32>
    %c0_29 = arith.constant 0 : index
    %c0_30 = arith.constant 0 : index
    %64 = vector.load %arg8[%c0_29, %c0_30] : memref<64x128xf32, #tpu.memory_space<vmem>>, vector<64x128xf32>
    tpu.vector_store %arg8[%c0_29, %c0_30], %50 {strides = array<i32>} : memref<64x128xf32, #tpu.memory_space<vmem>>, vector<64x128xf32>,
    %c0_31 = arith.constant 0 : index
    %c0_32 = arith.constant 0 : index
    %65 = vector.load %arg9[%c0_31, %c0_32] : memref<1x128xf32, #tpu.memory_space<vmem>>, vector<1x128xf32>
    tpu.vector_store %arg9[%c0_31, %c0_32], %54 {strides = array<i32>} : memref<1x128xf32, #tpu.memory_space<vmem>>, vector<1x128xf32>,
    %c0_33 = arith.constant 0 : index
    %c0_34 = arith.constant 0 : index
    %66 = vector.load %arg10[%c0_33, %c0_34] : memref<1x128xf32, #tpu.memory_space<vmem>>, vector<1x128xf32>
    tpu.vector_store %arg10[%c0_33, %c0_34], %63 {strides = array<i32>} : memref<1x128xf32, #tpu.memory_space<vmem>>, vector<1x128xf32>,
    return
  }
  func.func @transform_0(%arg0: i32) -> (i32, i32) {
    %c0_i32 = arith.constant 0 : i32
    %c0_i32_0 = arith.constant 0 : i32
    return %c0_i32, %arg0 : i32, i32
  }
  func.func @transform_1(%arg0: i32) -> (i32, i32) {
    %c0_i32 = arith.constant 0 : i32
    %c0_i32_0 = arith.constant 0 : i32
    %c0_i32_1 = arith.constant 0 : i32
    return %c0_i32, %c0_i32_0 : i32, i32
  }
  func.func @transform_2(%arg0: i32) -> (i32, i32) {
    %c0_i32 = arith.constant 0 : i32
    %c0_i32_0 = arith.constant 0 : i32
    %c0_i32_1 = arith.constant 0 : i32
    return %c0_i32, %c0_i32_0 : i32, i32
  }
  func.func @transform_3(%arg0: i32) -> (i32, i32) {
    %c0_i32 = arith.constant 0 : i32
    %c0_i32_0 = arith.constant 0 : i32
    %c0_i32_1 = arith.constant 0 : i32
    return %c0_i32, %c0_i32_0 : i32, i32
  }
  func.func @transform_4(%arg0: i32) -> (i32, i32) {
    %c0_i32 = arith.constant 0 : i32
    %c0_i32_0 = arith.constant 0 : i32
    %c0_i32_1 = arith.constant 0 : i32
    return %c0_i32, %c0_i32_0 : i32, i32
  }
  func.func @transform_5(%arg0: i32) -> (i32, i32) {
    %c0_i32 = arith.constant 0 : i32
    %c0_i32_0 = arith.constant 0 : i32
    %c0_i32_1 = arith.constant 0 : i32
    return %c0_i32, %c0_i32_0 : i32, i32
  }
  func.func @transform_6(%arg0: i32) -> (i32, i32) {
    %c0_i32 = arith.constant 0 : i32
    %c0_i32_0 = arith.constant 0 : i32
    %c0_i32_1 = arith.constant 0 : i32
    return %c0_i32, %c0_i32_0 : i32, i32
  }
  func.func @transform_7(%arg0: i32) -> (i32, i32) {
    %c0_i32 = arith.constant 0 : i32
    %c0_i32_0 = arith.constant 0 : i32
    return %c0_i32, %arg0 : i32, i32
  }
  func.func @transform_8(%arg0: i32) -> (i32, i32) {
    %c0_i32 = arith.constant 0 : i32
    %c0_i32_0 = arith.constant 0 : i32
    return %c0_i32, %arg0 : i32, i32
  }
  func.func @transform_9(%arg0: i32) -> (i32, i32) {
    %c0_i32 = arith.constant 0 : i32
    %c0_i32_0 = arith.constant 0 : i32
    return %c0_i32, %arg0 : i32, i32
  }
}

</mosaic_0001>

<bundles_post_ra>
// kernel: tpu_custom_call.1
= control target key start
LH: loop header
LB: loop body
LE: loop exit
PB: predicated region body
PF: predicated region fallthrough
CT: control target
= control target key end

     0   :  { %s1952_s0 = inlined_call_operand.vmem [shape: f32[64,256], index: 0, kind: input, shape index: {}]   ;;  %s1953_s1 = inlined_call_operand.vmem [shape: f32[64,1], index: 1, kind: input, shape index: {}]   ;;  %s1954_s2 = inlined_call_operand.vmem [shape: f32[64,1], index: 2, kind: input, shape index: {}]   ;;  %s1955_s3 = inlined_call_operand.vmem [shape: bf16[64,64], index: 3, kind: input, shape index: {}]   ;;  %s1956_s4 = inlined_call_operand.vmem [shape: f32[64,1], index: 4, kind: input, shape index: {}]   ;;  %s1957_s5 = inlined_call_operand.vmem [shape: bf16[64,64], index: 5, kind: input, shape index: {}]   ;;  %s1958_s6 = inlined_call_operand.vmem [shape: f32[64,1], index: 6, kind: input, shape index: {}]   ;;  %s1959_s7 = inlined_call_operand.hbm [shape: f32[64,256], index: 7, kind: output, shape index: {0}]   ;;  %s1960_s8 = inlined_call_operand.hbm [shape: f32[1,256], index: 8, kind: output, shape index: {1}]   ;;  %s1961_s9 = inlined_call_operand.hbm [shape: f32[1,256], index: 9, kind: output, shape index: {2}]  }
   0x1   :  { %1963 = sst [smem:[#allocation10_spill]] %s1952_s0 }
   0x2   :  { %15 = vsyncpa [#allocation4], 0 }
   0x3   :  { %17 = vsyncpa [#allocation4 + $0x1], 0 }
   0x4   :  { %18 = vsyncpa [#allocation6], 0 }
   0x5   :  { %20 = vsyncpa [#allocation6 + $0x1], 0  ;;  %s1565_s30 = smov 0   ;;  %s1567_s10 = smov 0  }
   0x6   :  { %s1569_s11 = smov 0   ;;  %s1571_s12 = smov 0  }
   0x7 LB: > { %s1586_s13 = sadd.s32 4294967295, %s1504_s12   ;;  %s1962_s14 = sadd.s32 4294967294, %s1504_s12   ;;  %s1504_s12 = sphi %s1571_s12, %s1971_s12   ;;  %s1500_s11 = sphi %s1569_s11, %s1970_s11   ;;  %s1496_s10 = sphi %s1567_s10, %s1969_s10   ;;  %s1492_s30 = sphi %s1565_s30, %s1968_s30  }
   0x8   : > { %s1590_s15 = sadd.s32 1, %s1504_s12   ;;  %s33_s16 = sadd.s32 1, %s1500_s11 }
   0x9   : > { %s30_s17 = ssub.s32 %s1504_s12, %s1590_s15  ;;  %p40_p0 = scmp.ne.s32.totalorder %s1500_s11, %s1496_s10 }
   0xa   : > { %p31_p1 = scmp.eq.s32.totalorder %s30_s17, 0  ;;  %p41_p2 = scmp.eq.s32.totalorder %s1504_s12, 0 }
   0xb   : > { %p196_p3 = scmp.eq.s32.totalorder %s1586_s13, 1  ;;  %p201_p4 = scmp.ne.s32.totalorder %s1496_s10, %s1492_s30 }
   0xc   : > { %s1602_s18 = scalar_select %p31_p1, %s1500_s11, %s33_s16  }
   0xd   : > { %p42_p5 = por %p41_p2, %p40_p0  ;;  %p1604_p6 = por %p196_p3, %p40_p0 }
   0xe   : > { %p202_p7 = scmp.eq.s32.totalorder %s1962_s14, 1  ;;  %p1220_p9 = scmp.ge.s32.totalorder %s1504_s12, 2 }
  0x10   : > { %p1610_p8 = por %p202_p7, %p201_p4  ;;  %288 = sbr.rel (%p1220_p9) target bundleno = 37 (0x25), region = 40 }
  0x17   : > { %291 = sbr.rel (!%p42_p5) target bundleno = 37 (0x25), region = 44  ;;  %s293_s21 = sand.u32 (%p42_p5), 1, %s1500_s11  }
  0x18   : > { %s1222_s22 = sshll.u32 (%p42_p5), %s1504_s12, 3  ;;  %s1221_s23 = sshll.u32 (%p42_p5), %s293_s21, 6 }
  0x19   : > { %s1966_s0 = sld [smem:[#allocation10_spill]] (%p42_p5)  ;;  %s295_s27 = scalar_lea.vmem (%p42_p5), [#allocation2], %s1221_s23 }
  0x1f   : > { %s297_s26 = scalar_lea.vmem %s1966_s0, %s1222_s22 }
  0x20   : > { %v339_v0 = vld [vmem:[%s297_s26] sm:$0xff]  ;;  %v341_v1 = vld [vmem:[%s297_s26 + $0x10] sm:$0xff] }
  0x21   : > { %v343_v2 = vld [vmem:[%s297_s26 + $0x20] sm:$0xff]  ;;  %340 = vst [vmem:[%s295_s27] sm:$0xff] %v339_v0  ;;  %342 = vst [vmem:[%s295_s27 + $0x8] sm:$0xff] %v341_v1  ;;  %v345_v3 = vld [vmem:[%s297_s26 + $0x30] sm:$0xff] }
  0x22   : > { %344 = vst [vmem:[%s295_s27 + $0x10] sm:$0xff] %v343_v2  ;;  %v347_v4 = vld [vmem:[%s297_s26 + $0x40] sm:$0xff]  ;;  %v349_v5 = vld [vmem:[%s297_s26 + $0x50] sm:$0xff]  ;;  %346 = vst [vmem:[%s295_s27 + $0x18] sm:$0xff] %v345_v3 }
  0x23   : > { %348 = vst [vmem:[%s295_s27 + $0x20] sm:$0xff] %v347_v4  ;;  %350 = vst [vmem:[%s295_s27 + $0x28] sm:$0xff] %v349_v5  ;;  %v351_v6 = vld [vmem:[%s297_s26 + $0x60] sm:$0xff]  ;;  %v353_v7 = vld [vmem:[%s297_s26 + $0x70] sm:$0xff] }
  0x24   : > { %352 = vst [vmem:[%s295_s27 + $0x30] sm:$0xff] %v351_v6  ;;  %354 = vst [vmem:[%s295_s27 + $0x38] sm:$0xff] %v353_v7 }
  0x25 PF: > { %p1223_p10 = scmp.ge.s32.totalorder %s1504_s12, 1  ;;  %p359_p11 = scmp.lt.s32.totalorder %s1504_s12, 3 }
  0x27   : > { %p360_p12 = pnand %p1223_p10, %p359_p11 }
  0x28   : > { %v553_v8 = vld [vmem:[%s1954_s2] sm:$0xff] (!%p360_p12)  ;;  %v1506_v10 = vmov (!%p360_p12), 0   ;;  %s1631_s21 = sand.u32 (!%p360_p12), 1, %s1496_s10   ;;  %v554_v11 = vld [vmem:[%s1954_s2 + $0x8] sm:$0xff] (!%p360_p12)  ;;  %v500_v13 = vld [vmem:[%s1953_s1 + $0x18] sm:$0xff] (!%p360_p12)  ;;  %vm697_vm0 = vcmask (!%p360_p12), 523264   ;;  %v418_v3 = vlaneseq (!%p360_p12) }
  0x29   : > { %363 = sbr.rel (%p360_p12) target bundleno = 770 (0x302), region = 82  ;;  %v497_v9 = vld [vmem:[%s1953_s1] sm:$0xff] (!%p360_p12)  ;;  %1355 = vset.pattern.permute.xlu1 (!%p360_p12), %v1506_v10  ;;  %1354 = vset.pattern.permute.xlu0 (!%p360_p12), %v1506_v10  ;;  %v498_v12 = vld [vmem:[%s1953_s1 + $0x8] sm:$0xff] (!%p360_p12)  ;;  %s1224_s26 = sshll.u32 (!%p360_p12), %s1631_s21, 6  ;;  %v499_v14 = vld [vmem:[%s1953_s1 + $0x10] sm:$0xff] (!%p360_p12)  ;;  %vm1507_vm2 = vmmov (!%p360_p12), 1  }
  0x2a   : > { %563 = vperm.xlu1 (!%p360_p12), %1355, %v553_v8   ;;  %507 = vperm.xlu0 (!%p360_p12), %1354, %v497_v9   ;;  %s368_s17 = scalar_lea.vmem (!%p360_p12), [#allocation2], %s1224_s26  ;;  %v556_v18 = vld [vmem:[%s1954_s2 + $0x18] sm:$0xff] (!%p360_p12)  ;;  %v555_v19 = vld [vmem:[%s1954_s2 + $0x10] sm:$0xff] (!%p360_p12)  ;;  %v502_v23 = vld [vmem:[%s1953_s1 + $0x28] sm:$0xff] (!%p360_p12)  ;;  %v419_v7 = vshrl.u32 (!%p360_p12), %v418_v3, 7  ;;  %s1800_s29 = scalar_lea.vmem (!%p360_p12), [#allocation3], %s1224_s26 }
  0x2b   : > { %v1648_v15 = vld [vmem:[%s368_s17] sm:$0xff] (!%p360_p12)  ;;  %v1650_v16 = vld [vmem:[%s368_s17 + $0x8] sm:$0xff] (!%p360_p12)  ;;  %v1652_v17 = vld [vmem:[%s368_s17 + $0x10] sm:$0xff] (!%p360_p12)  ;;  %s1071_s26 = sshll.u32 (!%p360_p12), %s1800_s29, 4  ;;  %s1246_s16 = sshll.u32 (!%p360_p12), %s1586_s13, 7  ;;  %s1824_s26 = int_to_ptr.vmem [resolvable:$true] %s1071_s26 }
  0x2c   : > { %v435_v20 = vadd.f32 (!%p360_p12), %v1650_v16, %v1648_v15  ;;  %v1662_v21 = vld [vmem:[%s368_s17 + $0x18] sm:$0xff] (!%p360_p12)  ;;  %v1664_v22 = vld [vmem:[%s368_s17 + $0x20] sm:$0xff] (!%p360_p12)  ;;  %v1673_v26 = vld [vmem:[%s368_s17 + $0x28] sm:$0xff] (!%p360_p12)  ;;  %s1833_s23 = scalar_lea.hbm (!%p360_p12), %s1959_s7, %s1246_s16  ;;  %s1051_s24 = scalar_lea.sflag (!%p360_p12), [#allocation4], %s1631_s21 }
  0x2d   : > { %v501_v24 = vld [vmem:[%s1953_s1 + $0x20] sm:$0xff] (!%p360_p12)  ;;  %v1677_v29 = vld [vmem:[%s368_s17 + $0x30] sm:$0xff] (!%p360_p12)  ;;  %v558_v30 = vld [vmem:[%s1954_s2 + $0x28] sm:$0xff] (!%p360_p12)  ;;  %s1382_s25 = scalar_lea.vmem (!%p360_p12), %s1824_s26, 1024  ;;  %s1509_s27 = smov (!%p360_p12), [#allocation3]  }
  0x2e   : > { %568 = vperm.xlu1 (!%p360_p12), %1355, %v554_v11   ;;  %512 = vperm.xlu0 (!%p360_p12), %1354, %v498_v12   ;;  %v436_v25 = vadd.f32 (!%p360_p12), %v435_v20, %v1652_v17  ;;  %v557_v31 = vld [vmem:[%s1954_s2 + $0x20] sm:$0xff] (!%p360_p12)  ;;  %v1686_v33 = vld [vmem:[%s368_s17 + $0x38] sm:$0xff] (!%p360_p12)  ;;  %v559_v35 = vld [vmem:[%s1954_s2 + $0x30] sm:$0xff] (!%p360_p12)  ;;  %v1753_v11 = vadd.s32 (!%p360_p12), 48, %v419_v7  ;;  %p1383_p13 = scmp.ne.s32.totalorder (!%p360_p12), %s1824_s26, %s1382_s25  ;;  %s1386_s14 = sshll.u32 (!%p360_p12), %s1509_s27, 4  ;;  %s1387_s14 = int_to_ptr.vmem [resolvable:$false] %s1386_s14 }
  0x2f   : > { %v503_v36 = vld [vmem:[%s1953_s1 + $0x30] sm:$0xff] (!%p360_p12)  ;;  %v630_v39 = vld [vmem:[%s1956_s4 + $0x8] sm:$0xff] (!%p360_p12)  ;;  %v629_v40 = vld [vmem:[%s1956_s4] sm:$0xff] (!%p360_p12)  ;;  %s1388_s28 = scalar_lea.vmem (!%p360_p12), %s1387_s14, 2048  ;;  %p1389_p2 = scmp.lt.s32.totalorder (!%p360_p12), %s1824_s26, %s1387_s14 }
  0x30   : > { %v437_v27 = vadd.f32 %v436_v25, %v1662_v21  ;;  %v632_v42 = vld [vmem:[%s1956_s4 + $0x18] sm:$0xff]  ;;  %v631_v43 = vld [vmem:[%s1956_s4 + $0x10] sm:$0xff]  ;;  %v1356_v45 = vld [vmem:[%s1955_s3] sm:$0xff]   ;;  %vm433_vm1 = vcmp.lt.s32.totalorder %v1753_v11, 52  ;;  %p1384_p0 = pnand %p1383_p13, %p1604_p6  ;;  %p1390_p3 = scmp.lt.s32.totalorder %s1388_s28, %s1382_s25 }
  0x31   : > { %v634_v46 = vld [vmem:[%s1956_s4 + $0x28] sm:$0xff]  ;;  %v633_v47 = vld [vmem:[%s1956_s4 + $0x20] sm:$0xff]  ;;  %1275 = vmatprep.mubr.msk.bf16.mxu0 %vm697_vm0, %v1356_v45  ;;  %v636_v49 = vld [vmem:[%s1956_s4 + $0x38] sm:$0xff] }
  0x32   : > { %522 = vperm.xlu1 %1355, %v500_v13   ;;  %517 = vperm.xlu0 %1354, %v499_v14   ;;  %v438_v28 = vadd.f32 %v437_v27, %v1664_v22  ;;  %v635_v50 = vld [vmem:[%s1956_s4 + $0x30] sm:$0xff]  ;;  %v933_v52 = vld [vmem:[%s1958_s6 + $0x8] sm:$0xff]  ;;  %v932_v53 = vld [vmem:[%s1958_s6] sm:$0xff]  ;;  %p1385_p1 = pneg %p1384_p0  ;;  %p1391_p4 = por %p1390_p3, %p1389_p2 }
  0x33   : > { %v935_v55 = vld [vmem:[%s1958_s6 + $0x18] sm:$0xff]  ;;  %v934_v56 = vld [vmem:[%s1958_s6 + $0x10] sm:$0xff]  ;;  %v937_v58 = vld [vmem:[%s1958_s6 + $0x28] sm:$0xff] }
  0x34   : > { %v439_v32 = vadd.f32 %v438_v28, %v1673_v26  ;;  %v936_v59 = vld [vmem:[%s1958_s6 + $0x20] sm:$0xff]  ;;  %v939_v62 = vld [vmem:[%s1958_s6 + $0x38] sm:$0xff]  ;;  %v938_v63 = vld [vmem:[%s1958_s6 + $0x30] sm:$0xff]  ;;  %p1392_p5 = pnand %p1391_p4, %p1385_p1 }
  0x35   : > { %vm1230_vm3 = vmpackc.low %vm1507_vm2, %vm433_vm1 }
  0x36   : > { %578 = vperm.xlu1 %1355, %v556_v18   ;;  %573 = vperm.xlu0 %1354, %v555_v19   ;;  %v440_v34 = vadd.f32 %v439_v32, %v1677_v29 }
  0x38   : > { %v441_v37 = vadd.f32 %v440_v34, %v1686_v33 }
  0x3a   : > { %532 = vperm.xlu1 %1355, %v502_v23   ;;  %527 = vperm.xlu0 %1354, %v501_v24   ;;  %v442_v38 = vrot.slane %v441_v37, 4 }
  0x3c   : > { %v443_v41 = vadd.f32 %v442_v38, %v441_v37 }
  0x3e   : > { %588 = vperm.xlu1 %1355, %v558_v30   ;;  %583 = vperm.xlu0 %1354, %v557_v31   ;;  %v444_v44 = vrot.slane %v443_v41, 2 }
  0x40   : > { %v445_v48 = vadd.f32 %v444_v44, %v443_v41 }
  0x42   : > { %593 = vperm.xlu1 %1355, %v559_v35   ;;  %537 = vperm.xlu0 %1354, %v503_v36   ;;  %v446_v51 = vrot.slane %v445_v48, 1 }
  0x44   : > { %v447_v54 = vadd.f32 %v446_v51, %v445_v48 }
  0x46   : > { %644 = vperm.xlu1 %1355, %v630_v39   ;;  %639 = vperm.xlu0 %1354, %v629_v40   ;;  %v448_v57 = vmul.f32 0.01923077, %v447_v54 }
  0x48   : > { %v449_v60 = vsub.f32 %v1648_v15, %v448_v57  ;;  %v450_v61 = vsub.f32 %v1650_v16, %v448_v57  ;;  %v451_v0 = vsub.f32 %v1652_v17, %v448_v57  ;;  %v452_v4 = vsub.f32 %v1662_v21, %v448_v57 }
  0x49   : > { %v453_v8 = vsub.f32 %v1664_v22, %v448_v57  ;;  %v454_v12 = vsub.f32 %v1673_v26, %v448_v57  ;;  %v455_v18 = vsub.f32 %v1677_v29, %v448_v57 }
  0x4a   : > { %654 = vperm.xlu1 %1355, %v632_v42   ;;  %649 = vperm.xlu0 %1354, %v631_v43   ;;  %v465_v1 = vmul.f32 %v449_v60, %v449_v60  ;;  %v466_v2 = vmul.f32 %v450_v61, %v450_v61  ;;  %v467_v5 = vmul.f32 %v451_v0, %v451_v0 }
  0x4b   : > { %v468_v9 = vmul.f32 %v452_v4, %v452_v4  ;;  %v469_v13 = vmul.f32 %v453_v8, %v453_v8  ;;  %v470_v19 = vmul.f32 %v454_v12, %v454_v12  ;;  %v463_v23 = vsel %vm433_vm1, %v455_v18, 0.0 }
  0x4c   : > { %v473_v6 = vadd.f32 %v466_v2, %v465_v1  ;;  %v471_v24 = vmul.f32 %v463_v23, %v463_v23 }
  0x4e   : > { %664 = vperm.xlu1 %1355, %v634_v46   ;;  %659 = vperm.xlu0 %1354, %v633_v47   ;;  %v474_v10 = vadd.f32 %v473_v6, %v467_v5 }
  0x50   : > { %v475_v14 = vadd.f32 %v474_v10, %v468_v9 }
  0x52   : > { %674 = vperm.xlu1 %1355, %v636_v49   ;;  %669 = vperm.xlu0 %1354, %v635_v50   ;;  %v476_v20 = vadd.f32 %v475_v14, %v469_v13 }
  0x54   : > { %v477_v25 = vadd.f32 %v476_v20, %v470_v19  ;;  %v1357_v19 = vld [vmem:[%s1955_s3 + $0x8] sm:$0xff]   ;;  %v1358_v20 = vld [vmem:[%s1955_s3 + $0x10] sm:$0xff]  }
  0x56   : > { %947 = vperm.xlu1 %1355, %v933_v52   ;;  %942 = vperm.xlu0 %1354, %v932_v53   ;;  %v478_v27 = vadd.f32 %v477_v25, %v471_v24  ;;  %v1360_v24 = vld [vmem:[%s1957_s5] sm:$0xff]  }
  0x57   : > { %1291 = vmatprep.mubr.msk.bf16.mxu1 %vm697_vm0, %v1360_v24 }
  0x58   : > { %v480_v28 = vrot.slane %v478_v27, 4 }
  0x5a   : > { %957 = vperm.xlu1 %1355, %v935_v55   ;;  %952 = vperm.xlu0 %1354, %v934_v56   ;;  %v481_v30 = vadd.f32 %v480_v28, %v478_v27 }
  0x5c   : > { %v482_v31 = vrot.slane %v481_v30, 2 }
  0x5e   : > { %967 = vperm.xlu1 %1355, %v937_v58   ;;  %962 = vperm.xlu0 %1354, %v936_v59   ;;  %v483_v32 = vadd.f32 %v482_v31, %v481_v30 }
  0x60   : > { %v484_v34 = vrot.slane %v483_v32, 1 }
  0x62   : > { %977 = vperm.xlu1 %1355, %v939_v62   ;;  %972 = vperm.xlu0 %1354, %v938_v63   ;;  %v485_v35 = vadd.f32 %v484_v34, %v483_v32 }
  0x64   : > { %v486_v36 = vmul.f32 0.01923077, %v485_v35 }
  0x66   : > { %v487_v37 = vadd.f32 1e-06, %v486_v36 }
  0x68   : > { %1364 = vrsqrt.f32 %v487_v37 }
  0x72   : > { %v1365_v38 = vpop.eup %1364 }
  0x73   : > { %v489_v39 = vmul.f32 %v1365_v38, %v449_v60  ;;  %v490_v42 = vmul.f32 %v1365_v38, %v450_v61  ;;  %v492_v49 = vmul.f32 %v1365_v38, %v452_v4  ;;  %v491_v50 = vmul.f32 %v1365_v38, %v451_v0 }
  0x74   : > { %v494_v61 = vmul.f32 %v1365_v38, %v454_v12  ;;  %v493_v62 = vmul.f32 %v1365_v38, %v453_v8  ;;  %v495_v7 = vmul.f32 %v1365_v38, %v463_v23  ;;  %v1508_v8 = vmov 0.0   ;;  %v1359_v23 = vld [vmem:[%s1955_s3 + $0x18] sm:$0xff]  }
  0xa9   : > { %v564_v40 = vpop.permute.xlu1 %563  ;;  %v508_v41 = vpop.permute.xlu0 %507 }
  0xaa   : > { %v545_v43 = vmul.f32 %v508_v41, %v489_v39 }
  0xac   : > { %v601_v47 = vadd.f32 %v564_v40, %v545_v43 }
  0xad   : > { %v569_v44 = vpop.permute.xlu1 %568  ;;  %v513_v45 = vpop.permute.xlu0 %512 }
  0xae   : > { %v546_v46 = vmul.f32 %v513_v45, %v490_v42 }
  0xb0   : > { %v602_v48 = vadd.f32 %v569_v44, %v546_v46 }
  0xb1   : > { %v523_v51 = vpop.permute.xlu1 %522  ;;  %v518_v52 = vpop.permute.xlu0 %517 }
  0xb2   : > { %v625_v53 = vpack.c.bf16 %v602_v48, %v601_v47  ;;  %v548_v54 = vmul.f32 %v523_v51, %v492_v49  ;;  %v547_v55 = vmul.f32 %v518_v52, %v491_v50 }
  0xb4   : > { %1267 = vmatprep.subr.bf16.mxu0 %v625_v53 }
  0xb5   : > { %v579_v56 = vpop.permute.xlu1 %578  ;;  %v574_v57 = vpop.permute.xlu0 %573  ;;  %1268 = vmatpush3.bf16.msra.mxu0 %v625_v53 }
  0xb6   : > { %v604_v58 = vadd.f32 %v579_v56, %v548_v54  ;;  %v603_v59 = vadd.f32 %v574_v57, %v547_v55 }
  0xb8   : > { %v626_v60 = vpack.c.bf16 %v604_v58, %v603_v59 }
  0xb9   : > { %v533_v63 = vpop.permute.xlu1 %532  ;;  %v528_v1 = vpop.permute.xlu0 %527 }
  0xba   : > { %1269 = vmatprep.subr.bf16.mxu0 %v626_v60  ;;  %v550_v2 = vmul.f32 %v533_v63, %v494_v61  ;;  %v549_v0 = vmul.f32 %v528_v1, %v493_v62 }
  0xbb   : > { %1270 = vmatpush3.bf16.msra.mxu0 %v626_v60 }
  0xbd   : > { %v589_v3 = vpop.permute.xlu1 %588  ;;  %v584_v4 = vpop.permute.xlu0 %583 }
  0xbe   : > { %v606_v5 = vadd.f32 %v589_v3, %v550_v2  ;;  %v605_v6 = vadd.f32 %v584_v4, %v549_v0 }
  0xc0   : > { %v627_v9 = vpack.c.bf16 %v606_v5, %v605_v6 }
  0xc1   : > { %v538_v10 = vpop.permute.xlu0 %537  ;;  %v594_v14 = vpop.permute.xlu1 %593 }
  0xc2   : > { %v551_v13 = vmul.f32 %v538_v10, %v495_v7  ;;  %1271 = vmatprep.subr.bf16.mxu0 %v627_v9 }
  0xc3   : > { %1272 = vmatpush3.bf16.msra.mxu0 %v627_v9 }
  0xc4   : > { %v607_v18 = vadd.f32 %v594_v14, %v551_v13 }
  0xc5   : > { %v640_v25 = vpop.permute.xlu0 %639  ;;  %v645_v27 = vpop.permute.xlu1 %644 }
  0xc6   : > { %v1231_v12 = vpack.c.bf16 %v1508_v8, %v607_v18 }
  0xc8   : > { %1273 = vmatprep.subr.msk.bf16.mxu0 %vm1230_vm3, %v1231_v12 }
  0xc9   : > { %1274 = vmatpush3.bf16.msk.msra.mxu0 %vm1230_vm3, %v1231_v12  ;;  %v650_v28 = vpop.permute.xlu0 %649  ;;  %v655_v30 = vpop.permute.xlu1 %654 }
  0xcc   : > { %1276 = vmatmul.mubr.msk.bf16.vlgmr.msra.gmra.mrb[0].mxu0 %vm697_vm0, %v1357_v19 }
  0xcd   : > { %1279 = vmatprep.mubr.msk.bf16.mxu0 %vm697_vm0, %v1358_v20  ;;  %v660_v35 = vpop.permute.xlu0 %659  ;;  %v665_v41 = vpop.permute.xlu1 %664 }
  0xd1   : > { %v670_v46 = vpop.permute.xlu0 %669  ;;  %v675_v50 = vpop.permute.xlu1 %674 }
  0xd4   : > { %1280 = vmatmul.mubr.msk.bf16.gmra.mrb[4].mxu0 %vm697_vm0, %v1359_v23 }
 0x19f   : > { %v1277_v31 = vpop.f32.mrb[0].mxu0 }
 0x1a0   : > { %v753_v32 = vadd.f32 %v1277_v31, %v650_v28  ;;  %v744_v34 = vpop.f32.mrb[1].mxu0 }
 0x1a1   : > { %v745_v36 = vadd.f32 %v744_v34, %v640_v25  ;;  %v1278_v37 = vpop.f32.mrb[2].mxu0 }
 0x1a2   : > { %v785_v38 = vmul.f32 0.70710677, %v753_v32  ;;  %v756_v39 = vadd.f32 %v1278_v37, %v655_v30  ;;  %v747_v40 = vpop.f32.mrb[3].mxu0  ;;  %v777_v0 = vmul.f32 0.5, %v753_v32 }
 0x1a3   : > { %v783_v42 = vmul.f32 0.70710677, %v745_v36  ;;  %v748_v43 = vadd.f32 %v747_v40, %v645_v27  ;;  %v775_v5 = vmul.f32 0.5, %v745_v36 }
 0x1a4   : > { %1366 = verf.f32 %v785_v38  ;;  %v786_v44 = vmul.f32 0.70710677, %v756_v39  ;;  %v778_v3 = vmul.f32 0.5, %v756_v39 }
 0x1a5   : > { %1368 = verf.f32 %v783_v42  ;;  %v784_v45 = vmul.f32 0.70710677, %v748_v43  ;;  %v776_v6 = vmul.f32 0.5, %v748_v43  ;;  %v1362_v42 = vld [vmem:[%s1957_s5 + $0x10] sm:$0xff]   ;;  %v1363_v43 = vld [vmem:[%s1957_s5 + $0x18] sm:$0xff]  }
 0x1a6   : > { %1370 = verf.f32 %v786_v44  ;;  %v943_v44 = vpop.permute.xlu0 %942 }
 0x1a7   : > { %1372 = verf.f32 %v784_v45  ;;  %v1281_v47 = vpop.f32.mrb[4].mxu0  ;;  %v948_v45 = vpop.permute.xlu1 %947 }
 0x1a8   : > { %v769_v48 = vadd.f32 %v1281_v47, %v670_v46  ;;  %v760_v49 = vpop.f32.mrb[5].mxu0 }
 0x1a9   : > { %v761_v51 = vadd.f32 %v760_v49, %v660_v35  ;;  %v1282_v52 = vpop.f32.mrb[6].mxu0 }
 0x1aa   : > { %v789_v53 = vmul.f32 0.70710677, %v769_v48  ;;  %v772_v54 = vadd.f32 %v1282_v52, %v675_v50  ;;  %v763_v55 = vpop.f32.mrb[7].mxu0  ;;  %v781_v27 = vmul.f32 0.5, %v769_v48  ;;  %v953_v46 = vpop.permute.xlu0 %952 }
 0x1ab   : > { %v787_v56 = vmul.f32 0.70710677, %v761_v51  ;;  %v764_v57 = vadd.f32 %v763_v55, %v665_v41  ;;  %v779_v31 = vmul.f32 0.5, %v761_v51  ;;  %v1361_v41 = vld [vmem:[%s1957_s5 + $0x8] sm:$0xff]   ;;  %v958_v47 = vpop.permute.xlu1 %957 }
 0x1ac   : > { %1374 = verf.f32 %v789_v53  ;;  %v790_v58 = vmul.f32 0.70710677, %v772_v54  ;;  %v782_v28 = vmul.f32 0.5, %v772_v54 }
 0x1ad   : > { %1376 = verf.f32 %v787_v56  ;;  %v788_v59 = vmul.f32 0.70710677, %v764_v57  ;;  %v780_v32 = vmul.f32 0.5, %v764_v57 }
 0x1ae   : > { %v1367_v60 = vpop.eup %1366  ;;  %1378 = verf.f32 %v790_v58  ;;  %v963_v56 = vpop.permute.xlu0 %962 }
 0x1af   : > { %v1369_v61 = vpop.eup %1368  ;;  %v801_v62 = vadd.f32 1.0, %v1367_v60  ;;  %1380 = verf.f32 %v788_v59 }
 0x1b0   : > { %v1371_v63 = vpop.eup %1370  ;;  %v799_v1 = vadd.f32 1.0, %v1369_v61 }
 0x1b1   : > { %v1373_v2 = vpop.eup %1372  ;;  %v802_v4 = vadd.f32 1.0, %v1371_v63  ;;  %v809_v9 = vmul.f32 %v801_v62, %v777_v0 }
 0x1b2   : > { %v800_v7 = vadd.f32 1.0, %v1373_v2  ;;  %v807_v13 = vmul.f32 %v799_v1, %v775_v5  ;;  %v973_v62 = vpop.permute.xlu0 %972 }
 0x1b3   : > { %v810_v10 = vmul.f32 %v802_v4, %v778_v3 }
 0x1b4   : > { %v808_v14 = vmul.f32 %v800_v7, %v776_v6 }
 0x1b5   : > { %v824_v18 = vpack.c.bf16 %v810_v10, %v809_v9 }
 0x1b6   : > { %v1375_v8 = vpop.eup %1374  ;;  %v823_v12 = vpack.c.bf16 %v808_v14, %v807_v13 }
 0x1b7   : > { %v1377_v19 = vpop.eup %1376  ;;  %v805_v20 = vadd.f32 1.0, %v1375_v8 }
 0x1b8   : > { %v1379_v23 = vpop.eup %1378  ;;  %v803_v24 = vadd.f32 1.0, %v1377_v19  ;;  %1283 = vmatprep.subr.bf16.mxu1 %v823_v12 }
 0x1b9   : > { %v1381_v25 = vpop.eup %1380  ;;  %v806_v30 = vadd.f32 1.0, %v1379_v23  ;;  %1284 = vmatpush3.bf16.msra.mxu1 %v823_v12  ;;  %v813_v35 = vmul.f32 %v805_v20, %v781_v27 }
 0x1ba   : > { %v804_v34 = vadd.f32 1.0, %v1381_v25  ;;  %1285 = vmatprep.subr.bf16.mxu1 %v824_v18  ;;  %v811_v37 = vmul.f32 %v803_v24, %v779_v31 }
 0x1bb   : > { %v814_v36 = vmul.f32 %v806_v30, %v782_v28 }
 0x1bc   : > { %v812_v38 = vmul.f32 %v804_v34, %v780_v32 }
 0x1bd   : > { %1286 = vmatpush3.bf16.msra.mxu1 %v824_v18  ;;  %v826_v39 = vpack.c.bf16 %v814_v36, %v813_v35 }
 0x1be   : > { %v825_v40 = vpack.c.bf16 %v812_v38, %v811_v37 }
 0x1c0   : > { %1287 = vmatprep.subr.bf16.mxu1 %v825_v40 }
 0x1c1   : > { %1288 = vmatpush3.bf16.msra.mxu1 %v825_v40 }
 0x1c2   : > { %1289 = vmatprep.subr.bf16.mxu1 %v826_v39 }
 0x1c5   : > { %1290 = vmatpush3.bf16.msra.mxu1 %v826_v39 }
 0x1c8   : > { %1292 = vmatmul.mubr.msk.bf16.vlgmr.msra.gmra.mrb[0].mxu1 %vm697_vm0, %v1361_v41 }
 0x1c9   : > { %1295 = vmatprep.mubr.msk.bf16.mxu1 %vm697_vm0, %v1362_v42 }
 0x1d0   : > { %1296 = vmatmul.mubr.msk.bf16.gmra.mrb[4].mxu1 %vm697_vm0, %v1363_v43 }
 0x29b   : > { %v1293_v48 = vpop.f32.mrb[0].mxu1 }
 0x29c   : > { %v926_v49 = vadd.f32 %v1293_v48, %v1652_v17  ;;  %v893_v50 = vpop.f32.mrb[1].mxu1  ;;  %v968_v17 = vpop.permute.xlu1 %967 }
 0x29d   : > { %v924_v51 = vadd.f32 %v893_v50, %v1648_v15  ;;  %v1294_v52 = vpop.f32.mrb[2].mxu1 }
 0x29e   : > { %v1792_v53 = vadd.f32 %v953_v46, %v926_v49  ;;  %v927_v54 = vadd.f32 %v1294_v52, %v1662_v21  ;;  %v896_v55 = vpop.f32.mrb[3].mxu1 }
 0x29f   : > { %v1795_v57 = vadd.f32 %v943_v44, %v924_v51  ;;  %v925_v58 = vadd.f32 %v896_v55, %v1650_v16 }
 0x2a0   : > { %1042 = vst [vmem:[%s1800_s29 + $0x10] sm:$0xff] %v1792_v53  ;;  %v1804_v15 = vadd.f32 %v958_v47, %v927_v54 }
 0x2a1   : > { %1040 = vst [vmem:[%s1800_s29] sm:$0xff] %v1795_v57  ;;  %v1808_v21 = vadd.f32 %v948_v45, %v925_v58 }
 0x2a2   : > { %1043 = vst [vmem:[%s1800_s29 + $0x18] sm:$0xff] %v1804_v15 }
 0x2a3   : > { %v988_v16 = vadd.f32 %v1808_v21, %v1795_v57  ;;  %1041 = vst [vmem:[%s1800_s29 + $0x8] sm:$0xff] %v1808_v21  ;;  %v1297_v59 = vpop.f32.mrb[4].mxu1 }
 0x2a4   : > { %v930_v60 = vadd.f32 %v1297_v59, %v1677_v29  ;;  %v909_v61 = vpop.f32.mrb[5].mxu1  ;;  %v978_v29 = vpop.permute.xlu1 %977 }
 0x2a5   : > { %v989_v63 = vadd.f32 %v988_v16, %v1792_v53  ;;  %v928_v1 = vadd.f32 %v909_v61, %v1664_v22  ;;  %v1298_v2 = vpop.f32.mrb[6].mxu1 }
 0x2a6   : > { %v1821_v0 = vadd.f32 %v973_v62, %v930_v60  ;;  %v931_v3 = vadd.f32 %v1298_v2, %v1686_v33  ;;  %v912_v4 = vpop.f32.mrb[7].mxu1 }
 0x2a7   : > { %v984_v5 = vadd.f32 %v963_v56, %v928_v1  ;;  %v990_v6 = vadd.f32 %v989_v63, %v1804_v15  ;;  %v929_v22 = vadd.f32 %v912_v4, %v1673_v26 }
 0x2a8   : > { %1046 = vst [vmem:[%s1800_s29 + $0x30] sm:$0xff] %v1821_v0  ;;  %v987_v7 = vadd.f32 %v978_v29, %v931_v3 }
 0x2a9   : > { %v991_v33 = vadd.f32 %v990_v6, %v984_v5  ;;  %1044 = vst [vmem:[%s1800_s29 + $0x20] sm:$0xff] %v984_v5  ;;  %v985_v9 = vadd.f32 %v968_v17, %v929_v22 }
 0x2aa   : > { %1047 = vst [vmem:[%s1800_s29 + $0x38] sm:$0xff] %v987_v7 }
 0x2ab   : > { %v992_v10 = vadd.f32 %v991_v33, %v985_v9  ;;  %1045 = vst [vmem:[%s1800_s29 + $0x28] sm:$0xff] %v985_v9 }
 0x2ac   : > { %1395 = shalt.err (!%p1392_p5)
}
 0x2ad   : > { %s1396_s29 = scalar_lea.hbm %s1833_s23, 1024  ;;  %s1400_s17 = scalar_lea.hbm %s1959_s7, 2048 }
 0x2ae   : > { %p1397_p7 = scmp.ne.s32.totalorder %s1833_s23, %s1396_s29  ;;  %p1401_p12 = scmp.lt.u32.totalorder %s1833_s23, %s1959_s7 }
 0x2af   : > { %p1402_p13 = scmp.lt.u32.totalorder %s1400_s17, %s1396_s29  ;;  %p1404_p1 = scmp.lt.u32.totalorder %s1396_s29, %s1833_s23 }
 0x2b0   : > { %p1398_p10 = pnand %p1397_p7, %p1604_p6 }
 0x2b1   : > { %p1403_p0 = por %p1402_p13, %p1401_p12 }
 0x2b2   : > { %p1399_p11 = pneg %p1398_p10 }
 0x2b3   : > { %p1405_p2 = por %p1404_p1, %p1403_p0 }
 0x2b5   : > { %p1406_p3 = pnand %p1405_p2, %p1399_p11 }
 0x2b7   : > { %1409 = shalt.err (!%p1406_p3)
}
 0x2b8   : > { %s1510_s25 = smov 128   ;;  %s1511_s28 = smov 256   ;;  %v993_v26 = vadd.f32 %v992_v10, %v1821_v0 }
 0x2b9   : > { %s1512_s16 = smov 8   ;;  %s1055_s29 = sand.u32 1, %s1586_s13  }
 0x2ba   : > { %1299 = dma.vmem_to_hbm [thread:$0]  (%p1604_p6), %s1824_s26, 1024, %s1833_s23, %s1051_s24, %s1510_s25, %s1511_s28, %s1512_s16   ;;  %v994_v13 = vadd.f32 %v993_v26, %v987_v7 }
 0x2bb   : > { %s1247_s22 = sshll.u32 %s1586_s13, 4  ;;  %s402_s17 = scalar_lea.vmem [#allocation5], %s1631_s21 }
 0x2bc   : > { %v995_v14 = vrot.slane %v994_v13, 4  ;;  %s1087_s27 = sshll.u32 %s402_s17, 4  ;;  %s1871_s26 = scalar_lea.hbm %s1960_s8, %s1247_s22  ;;  %s1873_s27 = int_to_ptr.vmem [resolvable:$true] %s1087_s27 }
 0x2bd   : > { %s1880_s0 = scalar_lea.sflag [#allocation6], %s1055_s29  ;;  %s1410_s23 = scalar_lea.vmem %s1873_s27, 16 }
 0x2be   : > { %v996_v18 = vadd.f32 %v995_v14, %v994_v13  ;;  %p1411_p4 = scmp.ne.s32.totalorder %s1873_s27, %s1410_s23  ;;  %s1513_s24 = smov [#allocation5]  }
 0x2bf   : > { %s1414_s25 = sshll.u32 %s1513_s24, 4  ;;  %s1415_s25 = int_to_ptr.vmem [resolvable:$false] %s1414_s25 }
 0x2c0   : > { %v997_v8 = vrot.slane %v996_v18, 2  ;;  %p1412_p5 = pnand %p1411_p4, %p1604_p6  ;;  %s1416_s28 = scalar_lea.vmem %s1415_s25, 32 }
 0x2c1   : > { %p1417_p10 = scmp.lt.s32.totalorder %s1873_s27, %s1415_s25  ;;  %p1418_p11 = scmp.lt.s32.totalorder %s1416_s28, %s1410_s23 }
 0x2c2   : > { %v998_v12 = vadd.f32 %v997_v8, %v996_v18  ;;  %p1413_p7 = pneg %p1412_p5 }
 0x2c3   : > { %p1419_p12 = por %p1418_p11, %p1417_p10 }
 0x2c4   : > { %v999_v19 = vrot.slane %v998_v12, 1 }
 0x2c5   : > { %p1420_p13 = pnand %p1419_p12, %p1413_p7 }
 0x2c6   : > { %v1000_v20 = vadd.f32 %v999_v19, %v998_v12 }
 0x2c8   : > { %v1001_v23 = vmul.f32 0.01923077, %v1000_v20 }
 0x2ca   : > { %v1002_v24 = vsub.f32 %v1795_v57, %v1001_v23  ;;  %v1003_v25 = vsub.f32 %v1808_v21, %v1001_v23  ;;  %v1004_v27 = vsub.f32 %v1792_v53, %v1001_v23  ;;  %v1005_v28 = vsub.f32 %v1804_v15, %v1001_v23  ;;  %1048 = vst [vmem:[%s402_s17] sm:$0x1] %v1001_v23 }
 0x2cb   : > { %v1006_v30 = vsub.f32 %v984_v5, %v1001_v23  ;;  %v1007_v31 = vsub.f32 %v985_v9, %v1001_v23  ;;  %v1008_v32 = vsub.f32 %v1821_v0, %v1001_v23 }
 0x2cc   : > { %1423 = shalt.err (!%p1420_p13)
}
 0x2cd   : > { %s1424_s16 = scalar_lea.hbm %s1871_s26, 16  ;;  %s1428_s14 = scalar_lea.hbm %s1960_s8, 32 }
 0x2ce   : > { %p1425_p0 = scmp.ne.s32.totalorder %s1871_s26, %s1424_s16  ;;  %p1429_p3 = scmp.lt.u32.totalorder %s1871_s26, %s1960_s8 }
 0x2cf   : > { %p1430_p4 = scmp.lt.u32.totalorder %s1428_s14, %s1424_s16  ;;  %p1432_p7 = scmp.lt.u32.totalorder %s1424_s16, %s1871_s26 }
 0x2d0   : > { %p1426_p1 = pnand %p1425_p0, %p1604_p6 }
 0x2d1   : > { %p1431_p5 = por %p1430_p4, %p1429_p3 }
 0x2d2   : > { %p1427_p2 = pneg %p1426_p1 }
 0x2d3   : > { %p1433_p10 = por %p1432_p7, %p1431_p5 }
 0x2d5   : > { %p1434_p11 = pnand %p1433_p10, %p1427_p2 }
 0x2d7   : > { %1437 = shalt.err (!%p1434_p11)
}
 0x2d8   : > { %1300 = dma.vmem_to_hbm [thread:$0]  (%p1604_p6), %s1873_s27, 16, %s1871_s26, %s1880_s0   ;;  %v1018_v34 = vmul.f32 %v1002_v24, %v1002_v24  ;;  %v1019_v35 = vmul.f32 %v1003_v25, %v1003_v25  ;;  %v1020_v36 = vmul.f32 %v1004_v27, %v1004_v27  ;;  %v1021_v38 = vmul.f32 %v1005_v28, %v1005_v28 }
 0x2d9   : > { %v1022_v40 = vmul.f32 %v1006_v30, %v1006_v30  ;;  %v1016_v42 = vsel %vm433_vm1, %v1008_v32, 0.0  ;;  %v1023_v43 = vmul.f32 %v1007_v31, %v1007_v31  ;;  %s408_s27 = scalar_lea.vmem [#allocation7], %s1631_s21  ;;  %s1912_s16 = scalar_lea.hbm %s1961_s9, %s1247_s22 }
 0x2da   : > { %v1026_v37 = vadd.f32 %v1019_v35, %v1018_v34  ;;  %v1024_v45 = vmul.f32 %v1016_v42, %v1016_v42  ;;  %s1100_s26 = sshll.u32 %s408_s27, 4  ;;  %s1514_s17 = smov [#allocation7]   ;;  %s1101_s26 = int_to_ptr.vmem [resolvable:$true] %s1100_s26 }
 0x2db   : > { %s1438_s29 = scalar_lea.vmem %s1101_s26, 16  ;;  %s1442_s14 = sshll.u32 %s1514_s17, 4  ;;  %s1443_s14 = int_to_ptr.vmem [resolvable:$false] %s1442_s14 }
 0x2dc   : > { %v1027_v39 = vadd.f32 %v1026_v37, %v1020_v36  ;;  %p1439_p12 = scmp.ne.s32.totalorder %s1101_s26, %s1438_s29  ;;  %s1444_s21 = scalar_lea.vmem %s1443_s14, 32 }
 0x2dd   : > { %p1445_p1 = scmp.lt.s32.totalorder %s1101_s26, %s1443_s14  ;;  %p1446_p2 = scmp.lt.s32.totalorder %s1444_s21, %s1438_s29 }
 0x2de   : > { %v1028_v41 = vadd.f32 %v1027_v39, %v1021_v38  ;;  %p1440_p13 = pnand %p1439_p12, %p1604_p6 }
 0x2df   : > { %p1447_p3 = por %p1446_p2, %p1445_p1 }
 0x2e0   : > { %v1029_v44 = vadd.f32 %v1028_v41, %v1022_v40  ;;  %p1441_p0 = pneg %p1440_p13 }
 0x2e2   : > { %v1030_v46 = vadd.f32 %v1029_v44, %v1023_v43  ;;  %p1448_p4 = pnand %p1447_p3, %p1441_p0 }
 0x2e4   : > { %v1031_v47 = vadd.f32 %v1030_v46, %v1024_v45 }
 0x2e6   : > { %v1033_v48 = vrot.slane %v1031_v47, 4 }
 0x2e8   : > { %v1034_v49 = vadd.f32 %v1033_v48, %v1031_v47 }
 0x2ea   : > { %v1035_v50 = vrot.slane %v1034_v49, 2 }
 0x2ec   : > { %v1036_v51 = vadd.f32 %v1035_v50, %v1034_v49 }
 0x2ee   : > { %v1037_v52 = vrot.slane %v1036_v51, 1 }
 0x2f0   : > { %v1038_v53 = vadd.f32 %v1037_v52, %v1036_v51 }
 0x2f2   : > { %v1039_v11 = vmul.f32 0.01923077, %v1038_v53 }
 0x2f4   : > { %1049 = vst [vmem:[%s408_s27] sm:$0x1] %v1039_v11 }
 0x2f5   : > { %1451 = shalt.err (!%p1448_p4)
}
 0x2f6   : > { %s1452_s13 = scalar_lea.hbm %s1912_s16, 16  ;;  %s1456_s25 = scalar_lea.hbm %s1961_s9, 32 }
 0x2f7   : > { %p1453_p5 = scmp.ne.s32.totalorder %s1912_s16, %s1452_s13  ;;  %p1457_p11 = scmp.lt.u32.totalorder %s1912_s16, %s1961_s9 }
 0x2f8   : > { %p1458_p12 = scmp.lt.u32.totalorder %s1456_s25, %s1452_s13  ;;  %p1460_p0 = scmp.lt.u32.totalorder %s1452_s13, %s1912_s16 }
 0x2f9   : > { %p1454_p7 = pnand %p1453_p5, %p1604_p6 }
 0x2fa   : > { %p1459_p13 = por %p1458_p12, %p1457_p11 }
 0x2fb   : > { %p1455_p10 = pneg %p1454_p7 }
 0x2fc   : > { %p1461_p1 = por %p1460_p0, %p1459_p13 }
 0x2fe   : > { %p1462_p2 = pnand %p1461_p1, %p1455_p10 }
 0x300   : > { %1465 = shalt.err (!%p1462_p2)
}
 0x301   : > { %1301 = dma.vmem_to_hbm [thread:$0]  (%p1604_p6), %s1101_s26, 16, %s1912_s16, %s1880_s0  }
 0x302 PF: > { %s1112_s28 = sand.u32 1, %s1492_s30   ;;  %p1306_p3 = pnand %p1220_p9, %p1610_p8 }
 0x303   : > { %s1113_s29 = scalar_lea.sflag [#allocation4], %s1112_s28 }
 0x304   : > { %1483 = dma.done.wait (!%p1306_p3), %s1113_s29, 1024  }
 0x305   : > { %1485 = vsyncadd (!%p1306_p3), %s1113_s29, 4294966272  ;;  %s1967_s17 = sadd.s32 4294967294, %s1504_s12  }
 0x306   : > { %s1121_s14 = sand.u32 1, %s1967_s17  }
 0x307   : > { %s1122_s21 = scalar_lea.sflag [#allocation6], %s1121_s14 }
 0x308   : > { %1487 = dma.done.wait (!%p1306_p3), %s1122_s21, 32  }
 0x309   : > { %1489 = vsyncadd (!%p1306_p3), %s1122_s21, 4294967264  ;;  %p23_p6 = scmp.ge.s32.totalorder %s1590_s15, 4   ;;  %s1968_s30 = smov %s1496_s10 }
 0x30a   : > { %s1969_s10 = smov %s1500_s11  ;;  %s1970_s11 = smov %s1602_s18 }
 0x30b   : > { %s1971_s12 = smov %s1590_s15  ;;  %25 = sbr.rel (!%p23_p6) target bundleno = 7 (0x7), region = 158 }
 0x312   :  { %1134 = vsyncpa [#allocation4], 1 }
 0x313   :  { %1136 = vsyncpa [#allocation4 + $0x1], 1 }
 0x314   :  { %1137 = vsyncpa [#allocation6], 1 }
 0x315   :  { %1139 = vsyncpa [#allocation6 + $0x1], 1 }

</bundles_post_ra>
